<compile_context>
chip_gen: v7x
topology: tpu7x:2x2x1
jax: 0.10.0
libtpu: 0.0.40
codegen_flags: <defaults>
</compile_context>

<pallas_src>
import functools

import numpy as np
import jax
import jax.numpy as jnp
from jax.experimental import pallas as pl
from jax.experimental.pallas import tpu as pltpu


def _convblock_kernel(x_ref, thr_ref, mask_ref, o_ref, *, kk):
    """x_ref: (Rblk, Lblk); thr_ref: (Rblk, kk); mask_ref: (kk, Lblk); o_ref: (Rblk, Lblk)."""
    x = x_ref[...].astype(jnp.float32)             # upcast per tile, acc in f32
    thr = thr_ref[...]                             # (Rblk, kk) f32
    # Two independent accumulation chains (summed once at the end) so the
    # unrolled offset loop does not serialize on add latency.
    acc0 = mask_ref[0:1, :] * jnp.maximum(x, thr[:, 0:1])
    acc1 = None
    if kk > 1:
        acc1 = mask_ref[1:2, :] * jnp.maximum(x, thr[:, 1:2])
    for p in range(2, kk):                         # kk small & static -> unrolled
        t = thr[:, p:p + 1]                        # (Rblk, 1) -> lane broadcast
        m = mask_ref[p:p + 1, :]                   # (1, Lblk) -> sublane broadcast
        term = m * jnp.maximum(x, t)
        if p % 2 == 0:
            acc0 = acc0 + term
        else:
            acc1 = acc1 + term
    acc = acc0 if acc1 is None else acc0 + acc1
    o_ref[...] = acc.astype(o_ref.dtype)


def _build_masks(H, W, k, dilation, padding, stride, Lh, Lw, HWpad):
    """(k*k, HWpad) f32 validity masks; depend only on geometry, not data."""
    rows = np.arange(H)[:, None]
    cols = np.arange(W)[None, :]
    masks = np.zeros((k * k, H, W), np.float32)
    for ki in range(k):
        for kj in range(k):
            wi = rows + padding - dilation * ki      # window top-left (padded coords)
            wj = cols + padding - dilation * kj
            vi = (wi >= 0) & (wi <= (Lh - 1) * stride) & (wi % stride == 0)
            vj = (wj >= 0) & (wj <= (Lw - 1) * stride) & (wj % stride == 0)
            masks[ki * k + kj] = (vi & vj).astype(np.float32)
    masks = masks.reshape(k * k, H * W)
    if HWpad != H * W:
        masks = np.pad(masks, ((0, 0), (0, HWpad - H * W)))
    return masks


def _vmem_capacity_bytes():
    """Per-core VMEM capacity; conservative 64 MiB (v7x) fallback."""
    try:
        info = pltpu.get_tpu_info()
        for attr in ("vmem_capacity_bytes", "vmem_bytes", "vmem_size_bytes"):
            v = getattr(info, attr, None)
            if v:
                return int(v)
    except Exception:
        pass
    return 64 << 20


def _pick_blocks(R, HWpad, target_block_bytes, elem_bytes=4):
    """Pick (rows_blk, lane_blk): rows multiple of 8 (or full R), lanes multiple
    of 128 (or full HWpad); non-dividing blocks are fine (grid uses cdiv)."""
    lanes_cap = max(128, (target_block_bytes // (8 * elem_bytes)) // 128 * 128)
    lane_blk = HWpad if lanes_cap >= HWpad else lanes_cap
    rows_cap = max(8, (target_block_bytes // (lane_blk * elem_bytes)) // 8 * 8)
    rows_blk = R if rows_cap >= R else rows_cap
    # v7x has 2 TensorCores: ensure the parallel grid has >= 2 steps when the
    # shape allows it, otherwise one core sits idle.
    if pl.cdiv(R, rows_blk) * pl.cdiv(HWpad, lane_blk) < 2:
        if rows_blk >= 16:
            rows_blk = max(8, (rows_blk // 2) // 8 * 8)
        elif lane_blk >= 256:
            lane_blk = max(128, (lane_blk // 2) // 128 * 128)
    return rows_blk, lane_blk


def conv_block_forward(x, thr, *, kernel_size, dilation=1, padding=0, stride=1):
    """Pallas implementation of ConvBlock.forward.  x: (N, C, H, W)."""
    N, C, H, W = x.shape
    k = kernel_size
    kk = k * k
    Lh = (H + 2 * padding - dilation * (k - 1) - 1) // stride + 1
    Lw = (W + 2 * padding - dilation * (k - 1) - 1) // stride + 1
    # nn.Fold((H, W), ...) consistency check (same constraint PyTorch enforces)
    assert (Lh - 1) * stride - 2 * padding + dilation * (k - 1) + 1 == H
    assert (Lw - 1) * stride - 2 * padding + dilation * (k - 1) + 1 == W

    HW = H * W
    HWpad = ((HW + 127) // 128) * 128             # lane-dense stores
    R = N * C

    x_flat = x.reshape(R, HW)
    if HWpad != HW:
        x_flat = jnp.pad(x_flat, ((0, 0), (0, HWpad - HW)))
    if thr.dtype != jnp.float32:
        thr = thr.astype(jnp.float32)
    thr_rows = jnp.tile(thr, (N, 1))              # (R, kk); row r -> thr[r % C]
    masks = jnp.asarray(
        _build_masks(H, W, k, dilation, padding, stride, Lh, Lw, HWpad))

    # Generation-aware block sizing: ~8 MiB blocks on 64 MiB VMEM (v7x),
    # up to 16 MiB on 128 MiB VMEM (v5e/v6e).
    vmem_cap = _vmem_capacity_bytes()
    target_blk = int(min(16 << 20,
                         max(1 << 20, (vmem_cap * 6) // 10 // 4 - (1 << 20))))
    rows_blk, lane_blk = _pick_blocks(R, HWpad, target_blk)
    grid = (pl.cdiv(R, rows_blk), pl.cdiv(HWpad, lane_blk))

    # Explicit VMEM budget: double-buffered (x + out) blocks + small tables.
    blk_bytes = rows_blk * lane_blk * 4
    thr_bytes = rows_blk * max(kk, 128) * 4       # lane padding of the kk dim
    mask_bytes = max(kk, 8) * lane_blk * 4        # sublane padding of the kk dim
    need = 4 * blk_bytes + 2 * thr_bytes + 2 * mask_bytes
    vmem_limit = int(min(vmem_cap * 85 // 100, max(48 << 20, 2 * need)))

    kern = functools.partial(_convblock_kernel, kk=kk)
    out_flat = pl.pallas_call(
        kern,
        out_shape=jax.ShapeDtypeStruct((R, HWpad), x.dtype),
        grid=grid,
        in_specs=[
            pl.BlockSpec((rows_blk, lane_blk), lambda r, l: (r, l)),
            pl.BlockSpec((rows_blk, kk), lambda r, l: (r, 0)),
            pl.BlockSpec((kk, lane_blk), lambda r, l: (0, l)),
        ],
        out_specs=pl.BlockSpec((rows_blk, lane_blk), lambda r, l: (r, l)),
        compiler_params=pltpu.CompilerParams(
            dimension_semantics=("parallel", "parallel"),
            vmem_limit_bytes=vmem_limit,
        ),
    )(x_flat, thr_rows, masks)

    if HWpad != HW:
        out_flat = out_flat[:, :HW]
    return out_flat.reshape(N, C, H, W)


def _reference_numpy(x, thr, k, dilation, padding, stride):
    """Direct unfold -> max -> fold emulation (mirrors the PyTorch forward)."""
    x = np.asarray(x, np.float32)
    thr = np.asarray(thr, np.float32)
    N, C, H, W = x.shape
    xp = np.pad(x, ((0, 0), (0, 0), (padding, padding), (padding, padding)))
    Lh = (H + 2 * padding - dilation * (k - 1) - 1) // stride + 1
    Lw = (W + 2 * padding - dilation * (k - 1) - 1) // stride + 1
    outp = np.zeros_like(xp)
    for m in range(Lh):
        for q in range(Lw):
            for ki in range(k):
                for kj in range(k):
                    i = m * stride + ki * dilation
                    j = q * stride + kj * dilation
                    outp[:, :, i, j] += np.maximum(
                        xp[:, :, i, j], thr[None, :, ki * k + kj])
    return outp[:, :, padding:padding + H, padding:padding + W]


if __name__ == "__main__":
    N, C, H, W = 2, 4, 16, 16
    kernel_size = 3          # dilation=1, padding=0, stride=1 (module defaults)

    key = jax.random.PRNGKey(0)
    kx, kt = jax.random.split(key)
    x = jax.random.normal(kx, (N, C, H, W), dtype=jnp.float32)
    # deterministic "init=1" style parameter: uniform(-0.1, 0.1)
    thr = jax.random.uniform(kt, (C, kernel_size * kernel_size),
                             dtype=jnp.float32, minval=-0.1, maxval=0.1)

    out = conv_block_forward(x, thr, kernel_size=kernel_size)
    out = jax.block_until_ready(out)

    ref = _reference_numpy(x, thr, kernel_size, 1, 0, 1)
    assert out.shape == (N, C, H, W)
    assert np.allclose(np.asarray(out), ref, rtol=1e-5, atol=1e-5)
    print("KERNEL_OK")
</pallas_src>

<mosaic_0001>
module attributes {stable_mosaic.version = 11 : i64} {
  func.func @_convblock_kernel(%arg0: i32, %arg1: i32, %arg2: memref<8x128xf32, #tpu.memory_space<vmem>>, %arg3: memref<8x9xf32, #tpu.memory_space<vmem>>, %arg4: memref<9x128xf32, #tpu.memory_space<vmem>>, %arg5: memref<8x128xf32, #tpu.memory_space<vmem>>) attributes {dimension_semantics = [#tpu.dimension_semantics<parallel>, #tpu.dimension_semantics<parallel>], iteration_bounds = array<i64: 1, 2>, scalar_prefetch = 0 : i64, scratch_operands = 0 : i64, tpu.core_type = #tpu.core_type<tc>, window_params = [{transform_indices = @transform_0, window_bounds = array<i64: 8, 128>}, {transform_indices = @transform_1, window_bounds = array<i64: 8, 9>}, {transform_indices = @transform_2, window_bounds = array<i64: 9, 128>}, {transform_indices = @transform_3, window_bounds = array<i64: 8, 128>}]} {
    %c0 = arith.constant 0 : index
    %c0_0 = arith.constant 0 : index
    %0 = vector.load %arg2[%c0, %c0_0] : memref<8x128xf32, #tpu.memory_space<vmem>>, vector<8x128xf32>
    %c0_1 = arith.constant 0 : index
    %c0_2 = arith.constant 0 : index
    %1 = vector.load %arg3[%c0_1, %c0_2] : memref<8x9xf32, #tpu.memory_space<vmem>>, vector<8x9xf32>
    %c0_3 = arith.constant 0 : index
    %c0_4 = arith.constant 0 : index
    %2 = vector.load %arg4[%c0_3, %c0_4] : memref<9x128xf32, #tpu.memory_space<vmem>>, vector<1x128xf32>
    %3 = vector.extract_strided_slice %1 {offsets = [0, 0], sizes = [8, 1], strides = [1, 1]} : vector<8x9xf32> to vector<8x1xf32>
    %4 = vector.broadcast %3 : vector<8x1xf32> to vector<8x128xf32>
    %5 = arith.maximumf %0, %4 : vector<8x128xf32>
    %6 = vector.broadcast %2 : vector<1x128xf32> to vector<8x128xf32>
    %7 = arith.mulf %6, %5 : vector<8x128xf32>
    %c1 = arith.constant 1 : index
    %c0_5 = arith.constant 0 : index
    %8 = vector.load %arg4[%c1, %c0_5] : memref<9x128xf32, #tpu.memory_space<vmem>>, vector<1x128xf32>
    %9 = vector.extract_strided_slice %1 {offsets = [0, 1], sizes = [8, 1], strides = [1, 1]} : vector<8x9xf32> to vector<8x1xf32>
    %10 = vector.broadcast %9 : vector<8x1xf32> to vector<8x128xf32>
    %11 = arith.maximumf %0, %10 : vector<8x128xf32>
    %12 = vector.broadcast %8 : vector<1x128xf32> to vector<8x128xf32>
    %13 = arith.mulf %12, %11 : vector<8x128xf32>
    %14 = vector.extract_strided_slice %1 {offsets = [0, 2], sizes = [8, 1], strides = [1, 1]} : vector<8x9xf32> to vector<8x1xf32>
    %c2 = arith.constant 2 : index
    %c0_6 = arith.constant 0 : index
    %15 = vector.load %arg4[%c2, %c0_6] : memref<9x128xf32, #tpu.memory_space<vmem>>, vector<1x128xf32>
    %16 = vector.broadcast %14 : vector<8x1xf32> to vector<8x128xf32>
    %17 = arith.maximumf %0, %16 : vector<8x128xf32>
    %18 = vector.broadcast %15 : vector<1x128xf32> to vector<8x128xf32>
    %19 = arith.mulf %18, %17 : vector<8x128xf32>
    %20 = arith.addf %7, %19 : vector<8x128xf32>
    %21 = vector.extract_strided_slice %1 {offsets = [0, 3], sizes = [8, 1], strides = [1, 1]} : vector<8x9xf32> to vector<8x1xf32>
    %c3 = arith.constant 3 : index
    %c0_7 = arith.constant 0 : index
    %22 = vector.load %arg4[%c3, %c0_7] : memref<9x128xf32, #tpu.memory_space<vmem>>, vector<1x128xf32>
    %23 = vector.broadcast %21 : vector<8x1xf32> to vector<8x128xf32>
    %24 = arith.maximumf %0, %23 : vector<8x128xf32>
    %25 = vector.broadcast %22 : vector<1x128xf32> to vector<8x128xf32>
    %26 = arith.mulf %25, %24 : vector<8x128xf32>
    %27 = arith.addf %13, %26 : vector<8x128xf32>
    %28 = vector.extract_strided_slice %1 {offsets = [0, 4], sizes = [8, 1], strides = [1, 1]} : vector<8x9xf32> to vector<8x1xf32>
    %c4 = arith.constant 4 : index
    %c0_8 = arith.constant 0 : index
    %29 = vector.load %arg4[%c4, %c0_8] : memref<9x128xf32, #tpu.memory_space<vmem>>, vector<1x128xf32>
    %30 = vector.broadcast %28 : vector<8x1xf32> to vector<8x128xf32>
    %31 = arith.maximumf %0, %30 : vector<8x128xf32>
    %32 = vector.broadcast %29 : vector<1x128xf32> to vector<8x128xf32>
    %33 = arith.mulf %32, %31 : vector<8x128xf32>
    %34 = arith.addf %20, %33 : vector<8x128xf32>
    %35 = vector.extract_strided_slice %1 {offsets = [0, 5], sizes = [8, 1], strides = [1, 1]} : vector<8x9xf32> to vector<8x1xf32>
    %c5 = arith.constant 5 : index
    %c0_9 = arith.constant 0 : index
    %36 = vector.load %arg4[%c5, %c0_9] : memref<9x128xf32, #tpu.memory_space<vmem>>, vector<1x128xf32>
    %37 = vector.broadcast %35 : vector<8x1xf32> to vector<8x128xf32>
    %38 = arith.maximumf %0, %37 : vector<8x128xf32>
    %39 = vector.broadcast %36 : vector<1x128xf32> to vector<8x128xf32>
    %40 = arith.mulf %39, %38 : vector<8x128xf32>
    %41 = arith.addf %27, %40 : vector<8x128xf32>
    %42 = vector.extract_strided_slice %1 {offsets = [0, 6], sizes = [8, 1], strides = [1, 1]} : vector<8x9xf32> to vector<8x1xf32>
    %c6 = arith.constant 6 : index
    %c0_10 = arith.constant 0 : index
    %43 = vector.load %arg4[%c6, %c0_10] : memref<9x128xf32, #tpu.memory_space<vmem>>, vector<1x128xf32>
    %44 = vector.broadcast %42 : vector<8x1xf32> to vector<8x128xf32>
    %45 = arith.maximumf %0, %44 : vector<8x128xf32>
    %46 = vector.broadcast %43 : vector<1x128xf32> to vector<8x128xf32>
    %47 = arith.mulf %46, %45 : vector<8x128xf32>
    %48 = arith.addf %34, %47 : vector<8x128xf32>
    %49 = vector.extract_strided_slice %1 {offsets = [0, 7], sizes = [8, 1], strides = [1, 1]} : vector<8x9xf32> to vector<8x1xf32>
    %c7 = arith.constant 7 : index
    %c0_11 = arith.constant 0 : index
    %50 = vector.load %arg4[%c7, %c0_11] : memref<9x128xf32, #tpu.memory_space<vmem>>, vector<1x128xf32>
    %51 = vector.broadcast %49 : vector<8x1xf32> to vector<8x128xf32>
    %52 = arith.maximumf %0, %51 : vector<8x128xf32>
    %53 = vector.broadcast %50 : vector<1x128xf32> to vector<8x128xf32>
    %54 = arith.mulf %53, %52 : vector<8x128xf32>
    %55 = arith.addf %41, %54 : vector<8x128xf32>
    %56 = vector.extract_strided_slice %1 {offsets = [0, 8], sizes = [8, 1], strides = [1, 1]} : vector<8x9xf32> to vector<8x1xf32>
    %c8 = arith.constant 8 : index
    %c0_12 = arith.constant 0 : index
    %57 = vector.load %arg4[%c8, %c0_12] : memref<9x128xf32, #tpu.memory_space<vmem>>, vector<1x128xf32>
    %58 = vector.broadcast %56 : vector<8x1xf32> to vector<8x128xf32>
    %59 = arith.maximumf %0, %58 : vector<8x128xf32>
    %60 = vector.broadcast %57 : vector<1x128xf32> to vector<8x128xf32>
    %61 = arith.mulf %60, %59 : vector<8x128xf32>
    %62 = arith.addf %48, %61 : vector<8x128xf32>
    %63 = arith.addf %62, %55 : vector<8x128xf32>
    %c0_13 = arith.constant 0 : index
    %c0_14 = arith.constant 0 : index
    %64 = vector.load %arg5[%c0_13, %c0_14] : memref<8x128xf32, #tpu.memory_space<vmem>>, vector<8x128xf32>
    tpu.vector_store %arg5[%c0_13, %c0_14], %63 {strides = array<i32>} : memref<8x128xf32, #tpu.memory_space<vmem>>, vector<8x128xf32>,
    return
  }
  func.func @transform_0(%arg0: i32, %arg1: i32) -> (i32, i32) {
    %c0_i32 = arith.constant 0 : i32
    return %arg0, %arg1 : i32, i32
  }
  func.func @transform_1(%arg0: i32, %arg1: i32) -> (i32, i32) {
    %c0_i32 = arith.constant 0 : i32
    %c0_i32_0 = arith.constant 0 : i32
    return %arg0, %c0_i32 : i32, i32
  }
  func.func @transform_2(%arg0: i32, %arg1: i32) -> (i32, i32) {
    %c0_i32 = arith.constant 0 : i32
    %c0_i32_0 = arith.constant 0 : i32
    return %c0_i32, %arg1 : i32, i32
  }
  func.func @transform_3(%arg0: i32, %arg1: i32) -> (i32, i32) {
    %c0_i32 = arith.constant 0 : i32
    return %arg0, %arg1 : i32, i32
  }
}

</mosaic_0001>

<bundles_post_ra>
// kernel: tpu_custom_call.1
= control target key start
LH: loop header
LB: loop body
LE: loop exit
PB: predicated region body
PF: predicated region fallthrough
CT: control target
= control target key end

     0   :  { %8 = vsyncpa [#allocation3], 0  ;;  %s1122_s0 = inlined_call_operand.hbm [shape: f32[8,256], index: 0, kind: input, shape index: {}]   ;;  %s1123_s1 = inlined_call_operand.hbm [shape: f32[8,9], index: 1, kind: input, shape index: {}]   ;;  %s1124_s2 = inlined_call_operand.hbm [shape: f32[9,256], index: 2, kind: input, shape index: {}]   ;;  %s1125_s3 = inlined_call_operand.hbm [shape: f32[8,256], index: 3, kind: output, shape index: {}]  }
   0x1   :  { %10 = vsyncpa [#allocation3 + $0x1], 0 }
   0x2   :  { %11 = vsyncpa [#allocation6], 0 }
   0x3   :  { %12 = vsyncpa [#allocation4], 0 }
   0x4   :  { %14 = vsyncpa [#allocation4 + $0x1], 0  ;;  %s843_s12 = smov 0   ;;  %s845_s13 = smov 0  }
   0x5   :  { %s847_s14 = smov 0   ;;  %s849_s15 = smov 0  }
   0x6   :  { %s851_s16 = smov 0   ;;  %s853_s17 = smov 0  }
   0x7 LB: > { %s29_s18 = sadd.s32 1, %s801_s16  ;;  %s41_s19 = sadd.s32 1, %s793_s14  ;;  %s805_s17 = sphi %s853_s17, %s20_s17   ;;  %s801_s16 = sphi %s851_s16, %s1149_s16   ;;  %s797_s15 = sphi %s849_s15, %s1148_s15   ;;  %s793_s14 = sphi %s847_s14, %s1147_s14   ;;  %s789_s13 = sphi %s845_s13, %s1146_s13   ;;  %s785_s12 = sphi %s843_s12, %s1145_s12  }
   0x8   : > { %p30_p0 = scmp.ge.s32.totalorder %s29_s18, 2  ;;  %p48_p1 = scmp.ne.s32.totalorder %s793_s14, %s789_s13 }
   0x9   : > { %p49_p2 = scmp.eq.s32.totalorder %s805_s17, 0  ;;  %p554_p5 = scmp.lt.s32.totalorder %s805_s17, 2 }
   0xa   : > { %s1151_s18 = smov (%p30_p0, %s29_s18), 0  ;;  %s171_s21 = sand.u32 1, %s805_s17  }
   0xb   : > { %p50_p4 = por %p49_p2, %p48_p1  ;;  %s37_s20 = ssub.s32 %s801_s16, %s1151_s18 }
   0xc   : > { %p39_p6 = scmp.eq.s32.totalorder %s37_s20, 0  ;;  %s173_s22 = sand.u32 1, %s793_s14  }
   0xd   : > { %s507_s23 = sshll.u32 %s801_s16, 7  ;;  %s506_s25 = sshll.u32 %s173_s22, 3 }
   0xe   : > { %s891_s24 = scalar_select %p39_p6, %s793_s14, %s41_s19  }
   0xf   : > { %s898_s28 = scalar_lea.hbm %s1122_s0, %s507_s23  ;;  %p900_p7 = pnand %p554_p5, %p50_p4 }
  0x10   : > { %s175_s30 = scalar_lea.vmem [#allocation2], %s506_s25  ;;  %s904_s5 = sshll.u32 %s173_s22, 4 }
  0x11   : > { %s184_s4 = sshll.u32 %s175_s30, 4  ;;  %s908_s6 = scalar_lea.sflag [#allocation3], %s171_s21  ;;  %s906_s4 = int_to_ptr.vmem [resolvable:$true] %s184_s4 }
  0x12   : > { %s627_s7 = scalar_lea.hbm %s898_s28, 128  ;;  %p629_p9 = pneg %p900_p7 }
  0x13   : > { %p628_p8 = scmp.ne.s32.totalorder %s898_s28, %s627_s7  ;;  %s632_s10 = scalar_lea.hbm %s1122_s0, 256 }
  0x14   : > { %p633_p12 = scmp.lt.u32.totalorder %s898_s28, %s1122_s0  ;;  %p634_p13 = scmp.lt.u32.totalorder %s632_s10, %s627_s7 }
  0x15   : > { %p630_p10 = pnand %p629_p9, %p628_p8  ;;  %p636_p2 = scmp.lt.u32.totalorder %s627_s7, %s898_s28 }
  0x16   : > { %p635_p0 = por %p634_p13, %p633_p12 }
  0x17   : > { %p631_p11 = pneg %p630_p10 }
  0x18   : > { %p637_p4 = por %p636_p2, %p635_p0 }
  0x1a   : > { %p638_p5 = pnand %p637_p4, %p631_p11 }
  0x1c   : > { %641 = shalt.err (!%p638_p5)
}
  0x1d   : > { %s642_s20 = scalar_lea.vmem %s906_s4, 128  ;;  %s807_s21 = smov [#allocation2]  }
  0x1e   : > { %p643_p6 = scmp.ne.s32.totalorder %s906_s4, %s642_s20  ;;  %s647_s22 = sshll.u32 %s807_s21, 4  ;;  %s648_s22 = int_to_ptr.vmem [resolvable:$false] %s647_s22 }
  0x1f   : > { %s649_s25 = scalar_lea.vmem %s648_s22, 256  ;;  %p650_p3 = scmp.lt.s32.totalorder %s906_s4, %s648_s22 }
  0x20   : > { %p645_p8 = pnand %p643_p6, %p629_p9  ;;  %p651_p12 = scmp.lt.s32.totalorder %s649_s25, %s642_s20 }
  0x22   : > { %p646_p10 = pneg %p645_p8  ;;  %p652_p13 = por %p651_p12, %p650_p3 }
  0x24   : > { %p653_p0 = pnand %p652_p13, %p646_p10 }
  0x26   : > { %656 = shalt.err (!%p653_p0)
}
  0x27   : > { %545 = dma.hbm_to_vmem [thread:$0]  (!%p900_p7), %s898_s28, 128, %s906_s4, %s908_s6  }
  0x28   : > { %s941_s30 = scalar_lea.hbm %s1124_s2, %s507_s23  ;;  %s195_s7 = scalar_lea.vmem [#allocation7], %s904_s5 }
  0x29   : > { %s201_s8 = sshll.u32 %s195_s7, 4  ;;  %s945_s9 = sadd.s32 4294967295, %s805_s17   ;;  %s971_s8 = int_to_ptr.vmem [resolvable:$true] %s201_s8 }
  0x2a   : > { %s502_s10 = sadd.s32 4294967294, %s805_s17   ;;  %p54_p3 = scmp.ne.s32.totalorder %s789_s13, %s785_s12 }
  0x2b   : > { %p1126_p11 = scmp.eq.s32.totalorder %s945_s9, 0  ;;  %p132_p2 = scmp.eq.s32.totalorder %s945_s9, 1 }
  0x2c   : > { %p138_p4 = scmp.eq.s32.totalorder %s502_s10, 1  ;;  %p503_p6 = scmp.ge.s32.totalorder %s805_s17, 1 }
  0x2d   : > { %p954_p5 = por %p1126_p11, %p54_p3  ;;  %p962_p8 = por %p132_p2, %p48_p1 }
  0x2e   : > { %p966_p10 = por %p138_p4, %p54_p3  ;;  %p145_p12 = scmp.lt.s32.totalorder %s805_s17, 3 }
  0x2f   : > { %s1131_s23 = scalar_select %p954_p5, 1, 0 }
  0x30   : > { %s1132_s28 = scalar_select %p962_p8, 1, 0 }
  0x31   : > { %s1133_s4 = scalar_select %p966_p10, 1, 0 }
  0x32   : > { %p973_p13 = pnand %p503_p6, %p145_p12  ;;  %s808_s11 = smov [#allocation5]  }
  0x33   : > { %s977_s19 = sshll.u32 %s808_s11, 4  ;;  %s657_s20 = scalar_lea.hbm %s941_s30, 256  ;;  %s161_s19 = int_to_ptr.vmem [resolvable:$true] %s977_s19 }
  0x34   : > { %s1134_s5 = scalar_select %p973_p13, 1, 0 }
  0x35   : > { %p658_p0 = scmp.ne.s32.totalorder %s941_s30, %s657_s20  ;;  %s662_s25 = scalar_lea.hbm %s1124_s2, 512 }
  0x36   : > { %p663_p4 = scmp.lt.u32.totalorder %s941_s30, %s1124_s2  ;;  %p664_p6 = scmp.lt.u32.totalorder %s662_s25, %s657_s20 }
  0x37   : > { %p660_p3 = pnand %p658_p0, %p629_p9  ;;  %p666_p11 = scmp.lt.u32.totalorder %s657_s20, %s941_s30 }
  0x38   : > { %p665_p12 = por %p664_p6, %p663_p4 }
  0x39   : > { %p661_p2 = pneg %p660_p3 }
  0x3a   : > { %p667_p10 = por %p666_p11, %p665_p12 }
  0x3c   : > { %p668_p8 = pnand %p667_p10, %p661_p2 }
  0x3e   : > { %671 = shalt.err (!%p668_p8)
}
  0x3f   : > { %s672_s7 = scalar_lea.vmem %s971_s8, 256  ;;  %s809_s10 = smov [#allocation7]  }
  0x40   : > { %p673_p0 = scmp.ne.s32.totalorder %s971_s8, %s672_s7  ;;  %s677_s11 = sshll.u32 %s809_s10, 4  ;;  %s678_s11 = int_to_ptr.vmem [resolvable:$false] %s677_s11 }
  0x41   : > { %s679_s21 = scalar_lea.vmem %s678_s11, 512  ;;  %p680_p5 = scmp.lt.s32.totalorder %s971_s8, %s678_s11 }
  0x42   : > { %p675_p3 = pnand %p673_p0, %p629_p9  ;;  %p681_p4 = scmp.lt.s32.totalorder %s679_s21, %s672_s7 }
  0x44   : > { %p676_p1 = pneg %p675_p3  ;;  %p682_p6 = por %p681_p4, %p680_p5 }
  0x46   : > { %p683_p11 = pnand %p682_p6, %p676_p1 }
  0x48   : > { %686 = shalt.err (!%p683_p11)
}
  0x49   : > { %s810_s20 = smov 256   ;;  %s811_s22 = smov 128  }
  0x4a   : > { %s812_s25 = smov 8   ;;  %p1135_p9 = scmp.eq.s32.totalorder %s945_s9, 0 }
  0x4b   : > { %548 = dma.hbm_to_vmem [thread:$0]  (!%p900_p7), %s941_s30, 256, %s971_s8, %s908_s6, %s810_s20, %s811_s22, %s812_s25  }
  0x4c   : > { %p1136_p8 = pneg %p973_p13  ;;  %s687_s10 = scalar_lea.hbm %s1123_s1, 128 }
  0x4d   : > { %p688_p5 = scmp.ne.s32.totalorder %s1123_s1, %s687_s10  ;;  %p694_p12 = scmp.lt.u32.totalorder %s687_s10, %s1123_s1 }
  0x4e   : > { %p1011_p10 = pnand %p1136_p8, %p1135_p9 }
  0x50   : > { %p689_p1 = pneg %p1011_p10 }
  0x52   : > { %p690_p7 = pnand %p689_p1, %p688_p5 }
  0x54   : > { %p691_p2 = pneg %p690_p7 }
  0x56   : > { %p696_p0 = pnand %p694_p12, %p691_p2 }
  0x58   : > { %699 = shalt.err (!%p696_p0)
}
  0x59   : > { %s700_s30 = scalar_lea.vmem %s161_s19, 128  ;;  %p708_p11 = scmp.lt.s32.totalorder %s161_s19, %s161_s19 }
  0x5a   : > { %p701_p3 = scmp.ne.s32.totalorder %s161_s19, %s700_s30  ;;  %p709_p9 = scmp.lt.s32.totalorder %s700_s30, %s700_s30 }
  0x5c   : > { %p703_p4 = pnand %p701_p3, %p689_p1  ;;  %p710_p8 = por %p709_p9, %p708_p11 }
  0x5e   : > { %p704_p6 = pneg %p703_p4 }
  0x60   : > { %p711_p13 = pnand %p710_p8, %p704_p6 }
  0x62   : > { %714 = shalt.err (!%p711_p13)
}
  0x63   : > { %541 = dma.hbm_to_vmem [thread:$0]  (!%p1011_p10), %s1123_s1, 128, %s161_s19, [#allocation6]  }
  0x64   : > { %p1138_p5 = scmp.ne.s32.totalorder %s1134_s5, 0 }
  0x65   : > { %s215_s22 = sand.u32 (!%p1138_p5), 1, %s945_s9   ;;  %s1035_s25 = sand.u32 (!%p1138_p5), 1, %s789_s13  }
  0x66   : > { %213 = sbr.rel (%p1138_p5) target bundleno = 288 (0x120), region = 32  ;;  %s511_s27 = sshll.u32 (!%p1138_p5), %s1035_s25, 3 }
  0x67   : > { %s216_s7 = scalar_lea.sflag (!%p1138_p5), [#allocation3], %s215_s22  ;;  %s1040_s10 = scalar_lea.vmem (!%p1138_p5), [#allocation2], %s511_s27 }
  0x68   : > { %p1139_p13 = scmp.ne.s32.totalorder (!%p1138_p5), %s1131_s23, 0 }
  0x6d   : > { %768 = dma.done.wait (%p1139_p13), %s216_s7, 128  }
  0x6e   : > { %770 = vsyncadd (%p1139_p13), %s216_s7, 4294967168  ;;  %p1140_p10 = scmp.eq.s32.totalorder %s945_s9, 0 }
  0x70   : > { %772 = dma.done.wait (%p1140_p10), [#allocation6], 128   ;;  %p1141_p1 = pmov %p1140_p10 }
  0x71   : > { %s513_s5 = sshll.u32 %s1035_s25, 4 }
  0x72   : > { %774 = vsyncadd (%p1141_p1), [#allocation6], 4294967168  ;;  %s1051_s19 = scalar_lea.vmem [#allocation7], %s513_s5 }
  0x73   : > { %776 = dma.done.wait (%p1139_p13), %s216_s7, 256  }
  0x74   : > { %778 = vsyncadd (%p1139_p13), %s216_s7, 4294967040  ;;  %v813_v0 = vmov 1   ;;  %v814_v1 = vmov 0   ;;  %v261_v2 = vld [vmem:[#allocation5] sm:$0xff]  ;;  %v815_v3 = vmov 3   ;;  %v816_v4 = vmov 2  }
  0x75   : > { %620 = vset.pattern.permute.xlu1 %v813_v0  ;;  %618 = vset.pattern.permute.xlu0 %v814_v1  ;;  %v817_v5 = vmov 4   ;;  %v818_v6 = vmov 5   ;;  %v819_v7 = vmov 6   ;;  %v820_v8 = vmov 8   ;;  %v260_v14 = vld [vmem:[%s1040_s10] sm:$0xff]  ;;  %s525_s9 = sshll.u32 %s797_s15, 7 }
  0x76   : > { %276 = vperm.xlu1 %620, %v261_v2   ;;  %265 = vperm.xlu0 %618, %v261_v2   ;;  %v821_v9 = vmov 7   ;;  %v515_v17 = vld [vmem:[%s1051_s19] ss:$0 sm:$0xff]  ;;  %v517_v18 = vld [vmem:[%s1051_s19 + $0x2] ss:$0 sm:$0xff]  ;;  %s259_s23 = scalar_lea.vmem [#allocation8], %s511_s27  ;;  %s1073_s29 = scalar_lea.hbm %s1125_s3, %s525_s9 }
  0x77   : > { %v519_v22 = vld [vmem:[%s1051_s19 + $0x4] ss:$0 sm:$0xff]  ;;  %v518_v26 = vld [vmem:[%s1051_s19 + $0x3] ss:$0 sm:$0xff]  ;;  %v521_v30 = vld [vmem:[%s1051_s19 + $0x6] ss:$0 sm:$0xff] }
  0x78   : > { %v516_v33 = vld [vmem:[%s1051_s19 + $0x1] ss:$0 sm:$0xff]  ;;  %v520_v34 = vld [vmem:[%s1051_s19 + $0x5] ss:$0 sm:$0xff]  ;;  %v523_v40 = vld [vmem:[%s1051_s19 + $0x8] ss:$0 sm:$0xff] }
  0x79   : > { %v522_v44 = vld [vmem:[%s1051_s19 + $0x7] ss:$0 sm:$0xff]  ;;  %s387_s26 = sshll.u32 %s259_s23, 4  ;;  %s372_s6 = scalar_lea.sflag [#allocation4], %s1035_s25  ;;  %s1075_s26 = int_to_ptr.vmem [resolvable:$true] %s387_s26 }
  0x7a   : > { %621 = vset.pattern.permute.xlu1 %v815_v3  ;;  %619 = vset.pattern.permute.xlu0 %v816_v4  ;;  %s715_s30 = scalar_lea.vmem %s1075_s26, 128  ;;  %p1142_p2 = scmp.ne.s32.totalorder %s1132_s28, 0 }
  0x7b   : > { %299 = vperm.xlu1 %621, %v261_v2   ;;  %287 = vperm.xlu0 %619, %v261_v2   ;;  %p716_p7 = scmp.ne.s32.totalorder %s1075_s26, %s715_s30  ;;  %s822_s15 = smov [#allocation8]  }
  0x7c   : > { %s719_s8 = sshll.u32 %s822_s15, 4  ;;  %s720_s8 = int_to_ptr.vmem [resolvable:$false] %s719_s8 }
  0x7d   : > { %p717_p12 = pnand %p716_p7, %p1142_p2  ;;  %s721_s20 = scalar_lea.vmem %s720_s8, 256 }
  0x7e   : > { %p722_p3 = scmp.lt.s32.totalorder %s1075_s26, %s720_s8  ;;  %p723_p4 = scmp.lt.s32.totalorder %s721_s20, %s715_s30 }
  0x7f   : > { %622 = vset.pattern.permute.xlu1 %v817_v5  ;;  %623 = vset.pattern.permute.xlu0 %v818_v6  ;;  %p718_p0 = pneg %p717_p12 }
  0x80   : > { %311 = vperm.xlu1 %622, %v261_v2   ;;  %323 = vperm.xlu0 %623, %v261_v2   ;;  %p724_p6 = por %p723_p4, %p722_p3 }
  0x82   : > { %p725_p11 = pnand %p724_p6, %p718_p0 }
  0x84   : > { %624 = vset.pattern.permute.xlu1 %v819_v7  ;;  %626 = vset.pattern.permute.xlu0 %v820_v8 }
  0x85   : > { %335 = vperm.xlu1 %624, %v261_v2   ;;  %359 = vperm.xlu0 %626, %v261_v2  }
  0x89   : > { %625 = vset.pattern.permute.xlu1 %v821_v9 }
  0x8a   : > { %347 = vperm.xlu1 %625, %v261_v2  }
  0xf5   : > { %v277_v10 = vpop.permute.xlu1 %276  ;;  %v266_v11 = vpop.permute.xlu0 %265 }
  0xf6   : > { %v268_v15 = vmax.f32 %v260_v14, %v266_v11  ;;  %v279_v27 = vmax.f32 %v260_v14, %v277_v10 }
  0xf8   : > { %v273_v23 = vmul.f32 %v515_v17, %v268_v15  ;;  %v284_v41 = vmul.f32 %v516_v33, %v279_v27 }
  0xfa   : > { %v300_v12 = vpop.permute.xlu1 %299  ;;  %v288_v13 = vpop.permute.xlu0 %287 }
  0xfb   : > { %v290_v16 = vmax.f32 %v260_v14, %v288_v13  ;;  %v302_v24 = vmax.f32 %v260_v14, %v300_v12 }
  0xfd   : > { %v295_v25 = vmul.f32 %v517_v18, %v290_v16  ;;  %v307_v36 = vmul.f32 %v518_v26, %v302_v24 }
  0xff   : > { %v312_v19 = vpop.permute.xlu1 %311  ;;  %v324_v21 = vpop.permute.xlu0 %323  ;;  %v296_v37 = vadd.f32 %v295_v25, %v273_v23  ;;  %v308_v46 = vadd.f32 %v307_v36, %v284_v41 }
 0x100   : > { %v314_v20 = vmax.f32 %v260_v14, %v312_v19  ;;  %v326_v29 = vmax.f32 %v260_v14, %v324_v21 }
 0x102   : > { %v319_v28 = vmul.f32 %v519_v22, %v314_v20  ;;  %v331_v43 = vmul.f32 %v520_v34, %v326_v29 }
 0x104   : > { %v336_v31 = vpop.permute.xlu1 %335  ;;  %v360_v32 = vpop.permute.xlu0 %359  ;;  %v320_v42 = vadd.f32 %v319_v28, %v296_v37  ;;  %v332_v50 = vadd.f32 %v331_v43, %v308_v46 }
 0x105   : > { %v338_v35 = vmax.f32 %v260_v14, %v336_v31  ;;  %v362_v38 = vmax.f32 %v260_v14, %v360_v32 }
 0x107   : > { %v343_v39 = vmul.f32 %v521_v30, %v338_v35  ;;  %v367_v48 = vmul.f32 %v523_v40, %v362_v38 }
 0x109   : > { %v348_v45 = vpop.permute.xlu1 %347  ;;  %v344_v47 = vadd.f32 %v343_v39, %v320_v42 }
 0x10a   : > { %v350_v49 = vmax.f32 %v260_v14, %v348_v45 }
 0x10b   : > { %v368_v52 = vadd.f32 %v367_v48, %v344_v47 }
 0x10c   : > { %v355_v51 = vmul.f32 %v522_v44, %v350_v49 }
 0x10e   : > { %v356_v53 = vadd.f32 %v355_v51, %v332_v50 }
 0x110   : > { %v369_v54 = vadd.f32 %v368_v52, %v356_v53 }
 0x112   : > { %370 = vst [vmem:[%s259_s23] sm:$0xff] %v369_v54 }
 0x113   : > { %728 = shalt.err (!%p725_p11)
}
 0x114   : > { %s729_s22 = scalar_lea.hbm %s1073_s29, 128  ;;  %s733_s7 = scalar_lea.hbm %s1125_s3, 256 }
 0x115   : > { %p730_p9 = scmp.ne.s32.totalorder %s1073_s29, %s729_s22  ;;  %p734_p13 = scmp.lt.u32.totalorder %s1073_s29, %s1125_s3 }
 0x116   : > { %p735_p10 = scmp.lt.u32.totalorder %s733_s7, %s729_s22  ;;  %p737_p7 = scmp.lt.u32.totalorder %s729_s22, %s1073_s29 }
 0x117   : > { %p731_p8 = pnand %p730_p9, %p1142_p2 }
 0x118   : > { %p736_p1 = por %p735_p10, %p734_p13 }
 0x119   : > { %p732_p5 = pneg %p731_p8 }
 0x11a   : > { %p738_p12 = por %p737_p7, %p736_p1 }
 0x11c   : > { %p739_p0 = pnand %p738_p12, %p732_p5 }
 0x11e   : > { %742 = shalt.err (!%p739_p0)
}
 0x11f   : > { %536 = dma.vmem_to_hbm [thread:$0]  (%p1142_p2), %s1075_s26, 128, %s1073_s29, %s372_s6  }
 0x120 PF: > { %s399_s19 = sand.u32 1, %s785_s12   ;;  %p1143_p3 = scmp.ne.s32.totalorder %s1133_s4, 0 }
 0x121   : > { %p1144_p4 = scmp.ge.s32.totalorder %s805_s17, 2  ;;  %s400_s9 = scalar_lea.sflag [#allocation4], %s399_s19 }
 0x123   : > { %p550_p6 = pnand %p1144_p4, %p1143_p3 }
 0x125   : > { %780 = dma.done.wait (!%p550_p6), %s400_s9, 128  }
 0x126   : > { %782 = vsyncadd (!%p550_p6), %s400_s9, 4294967168  ;;  %s20_s17 = sadd.s32 1, %s805_s17   ;;  %s1145_s12 = smov %s789_s13 }
 0x127   : > { %p17_p11 = scmp.ge.s32.totalorder %s20_s17, 4   ;;  %s1146_s13 = smov %s793_s14 }
 0x128   : > { %s1147_s14 = smov %s891_s24  ;;  %s1148_s15 = smov %s801_s16 }
 0x129   : > { %s1149_s16 = smov %s1151_s18  ;;  %19 = sbr.rel (!%p17_p11) target bundleno = 7 (0x7), region = 93 }
 0x130   :  { %405 = vsyncpa [#allocation3], 1 }
 0x131   :  { %407 = vsyncpa [#allocation3 + $0x1], 1 }
 0x132   :  { %408 = vsyncpa [#allocation6], 1 }
 0x133   :  { %409 = vsyncpa [#allocation4], 1 }
 0x134   :  { %411 = vsyncpa [#allocation4 + $0x1], 1 }

</bundles_post_ra>
